<compile_context>
chip_gen: v7x
topology: tpu7x:2x2x1
jax: 0.10.0
libtpu: 0.0.40
codegen_flags: <defaults>
</compile_context>

<pallas_src>
import functools

import jax
import jax.numpy as jnp
from jax.experimental import pallas as pl
from jax.experimental.pallas import tpu as pltpu


def _round_up(n, m):
    return ((n + m - 1) // m) * m


# Conservative tile budget so the same tiling fits v5e/v6e (128 MiB VMEM) and
# v7x (64 MiB VMEM) with headroom for compiler-internal scratch.
_VMEM_TILE_BUDGET = 40 * 1024 * 1024


def _vmem_bytes_estimate(tb, dp, hp2, hp, out_itemsize):
    """Rough per-pass VMEM usage (double-buffered tiles, single-buffered W)."""
    bf16, f32 = 2, 4
    p1 = (2 * tb * dp * bf16          # x tile (double-buffered)
          + dp * hp2 * bf16           # W, resident, Buffered(1)
          + 2 * tb * hp2 * bf16       # y output tile (double-buffered)
          + 2 * 2 * hp2 * f32)        # per-tile sum / sumsq rows
    p2 = (2 * tb * hp2 * bf16         # y input tile
          + 2 * hp2 * f32             # scale + shift, Buffered(1)
          + 2 * tb * hp * out_itemsize)
    return max(p1, p2)


# --------------------------------------------------------------------------
# Pass 1: Linear on the MXU (bf16 in, f32 accumulate) + per-tile batch stats.
# Fully parallel over batch tiles (per-tile partial sums, no accumulator).
# --------------------------------------------------------------------------
def _linear_stats_kernel(x_ref, w_ref, y_ref, sum_ref, sq_ref, *,
                         tb, b_real, mask_needed):
    y = jnp.dot(x_ref[...], w_ref[...], preferred_element_type=jnp.float32)
    y_ref[...] = y.astype(y_ref.dtype)      # bf16 intermediate (halves HBM I/O)

    if mask_needed:
        i = pl.program_id(0)
        is_last = i == pl.num_programs(0) - 1

        @pl.when(is_last)
        def _():
            # Only the last tile contains batch-padding rows.
            row = jax.lax.broadcasted_iota(jnp.int32, y.shape, 0) + i * tb
            ym = jnp.where(row < b_real, y, 0.0)
            sum_ref[...] = jnp.sum(ym, axis=0, keepdims=True)
            sq_ref[...] = jnp.sum(ym * ym, axis=0, keepdims=True)

        @pl.when(jnp.logical_not(is_last))
        def _():
            sum_ref[...] = jnp.sum(y, axis=0, keepdims=True)
            sq_ref[...] = jnp.sum(y * y, axis=0, keepdims=True)
    else:
        sum_ref[...] = jnp.sum(y, axis=0, keepdims=True)
        sq_ref[...] = jnp.sum(y * y, axis=0, keepdims=True)


# --------------------------------------------------------------------------
# Pass 2: fused BatchNorm apply (precomputed scale/shift) + GLU.
# Fully parallel over batch tiles; lane-dense output store.
# --------------------------------------------------------------------------
def _bn_glu_kernel(y_ref, scale_ref, shift_ref, out_ref, *, hp):
    yhat = y_ref[...].astype(jnp.float32) * scale_ref[...] + shift_ref[...]
    a = yhat[:, :hp]          # lane-aligned split (hp is a multiple of 128)
    g = yhat[:, hp:]
    out_ref[...] = (a * jax.nn.sigmoid(g)).astype(out_ref.dtype)


def prepare_glu_params(w, gamma, beta):
    """Pad/cast parameters once (parameter-init time, not per call).

    w:     (D_in, D_out)  Linear weight (transposed vs torch.nn.Linear.weight)
    gamma: (1, D_out) or (D_out,)  BatchNorm weight
    beta:  (1, D_out) or (D_out,)  BatchNorm bias
    The Linear bias is not needed: it cancels under training-mode BatchNorm.
    """
    d_in, d_out = w.shape
    H = d_out // 2
    dp = _round_up(d_in, 128)           # lane-pad contracted dim
    hp = _round_up(H, 128)              # lane-pad each GLU half independently
    hp2 = 2 * hp

    wb = w.astype(jnp.bfloat16)
    w_p = jnp.zeros((dp, hp2), jnp.bfloat16)
    w_p = w_p.at[:d_in, :H].set(wb[:, :H]).at[:d_in, hp:hp + H].set(wb[:, H:])

    g = jnp.reshape(gamma, (-1,)).astype(jnp.float32)
    bt = jnp.reshape(beta, (-1,)).astype(jnp.float32)
    gamma_p = jnp.ones((1, hp2), jnp.float32)
    gamma_p = gamma_p.at[0, :H].set(g[:H]).at[0, hp:hp + H].set(g[H:])
    beta_p = jnp.zeros((1, hp2), jnp.float32)
    beta_p = beta_p.at[0, :H].set(bt[:H]).at[0, hp:hp + H].set(bt[H:])

    return dict(w_p=w_p, gamma_p=gamma_p, beta_p=beta_p,
                d_in=d_in, d_out=d_out, H=H, hp=hp, hp2=hp2, dp=dp)


def glu_layer(x, params, *, block_b=512, out_dtype=jnp.float32, eps=1e-5):
    """GLU(BatchNorm1d(Linear(x))), training-mode batch statistics.

    x: (B, D_in) float32.  Returns (B, D_out // 2) in out_dtype.
    """
    B, d_in = x.shape
    assert d_in == params["d_in"]
    H, hp, hp2, dp = params["H"], params["hp"], params["hp2"], params["dp"]
    w_p, gamma_p, beta_p = params["w_p"], params["gamma_p"], params["beta_p"]
    out_itemsize = jnp.dtype(out_dtype).itemsize

    # ---- tile-size / VMEM budget (generation-safe: fits v7x's 64 MiB) ----
    b8 = _round_up(B, 8)
    tb = _round_up(min(block_b, b8), 8)
    while (_vmem_bytes_estimate(tb, dp, hp2, hp, out_itemsize)
           > _VMEM_TILE_BUDGET and tb > 8):
        tb = max(8, (tb // 2 // 8) * 8)
    bp = _round_up(b8, tb)
    nb = bp // tb
    vmem_limit = int(min(max(
        _vmem_bytes_estimate(tb, dp, hp2, hp, out_itemsize) + (2 << 20),
        32 << 20), 50 << 20))
    # TODO(synk): tile the 2*hp (N) axis with a second grid dimension once the
    # resident W (dp * 2*hp * 2 B) alone exceeds the VMEM budget.

    # ---- pad x only if needed (trailing remainder), cast to bf16 for MXU ----
    if (bp, dp) != (B, d_in):
        x_p = jnp.pad(x, ((0, bp - B), (0, dp - d_in)))
    else:
        x_p = x
    x_p = x_p.astype(jnp.bfloat16)

    mask_needed = bp > B

    # ---- pass 1: Linear + per-tile partial stats (parallel over tiles) ----
    y, ysum, ysq = pl.pallas_call(
        functools.partial(_linear_stats_kernel, tb=tb, b_real=B,
                          mask_needed=mask_needed),
        grid=(nb,),
        in_specs=[
            pl.BlockSpec((tb, dp), lambda i: (i, 0)),                 # x tile
            pl.BlockSpec((dp, hp2), lambda i: (0, 0),
                         pipeline_mode=pl.Buffered(1)),               # W resident
        ],
        out_specs=(
            pl.BlockSpec((tb, hp2), lambda i: (i, 0)),                # y tile
            pl.BlockSpec((1, hp2), lambda i: (i, 0)),                 # partial sum
            pl.BlockSpec((1, hp2), lambda i: (i, 0)),                 # partial sumsq
        ),
        out_shape=(
            jax.ShapeDtypeStruct((bp, hp2), jnp.bfloat16),
            jax.ShapeDtypeStruct((nb, hp2), jnp.float32),
            jax.ShapeDtypeStruct((nb, hp2), jnp.float32),
        ),
        compiler_params=pltpu.CompilerParams(
            dimension_semantics=("parallel",),
            vmem_limit_bytes=vmem_limit),
    )(x_p, w_p)

    # ---- tiny epilogue: reduce partials, fold mean/var + affine to scale/shift
    # TODO(synk): E[y^2]-E[y]^2 in f32 can lose precision for very large |y|/B;
    # switch to a two-sweep reduction if tighter fidelity is required.
    mean = jnp.sum(ysum, axis=0, keepdims=True) / B
    var = jnp.maximum(jnp.sum(ysq, axis=0, keepdims=True) / B - mean * mean, 0.0)
    scale = gamma_p * jax.lax.rsqrt(var + eps)
    shift = beta_p - mean * scale

    # ---- pass 2: normalize + GLU (fully parallel over batch tiles) ----
    out_p = pl.pallas_call(
        functools.partial(_bn_glu_kernel, hp=hp),
        grid=(nb,),
        in_specs=[
            pl.BlockSpec((tb, hp2), lambda i: (i, 0)),                # y tile (bf16)
            pl.BlockSpec((1, hp2), lambda i: (0, 0),
                         pipeline_mode=pl.Buffered(1)),               # scale
            pl.BlockSpec((1, hp2), lambda i: (0, 0),
                         pipeline_mode=pl.Buffered(1)),               # shift
        ],
        out_specs=pl.BlockSpec((tb, hp), lambda i: (i, 0)),
        out_shape=jax.ShapeDtypeStruct((bp, hp), out_dtype),
        compiler_params=pltpu.CompilerParams(
            dimension_semantics=("parallel",),
            vmem_limit_bytes=vmem_limit),
    )(y, scale, shift)

    return out_p[:B, :H]


def _reference(x, w, b, gamma, beta):
    """Pure-JAX f32 reference matching the PyTorch module (training-mode BN)."""
    y = x @ w + b
    mean = jnp.mean(y, axis=0, keepdims=True)
    var = jnp.mean((y - mean) ** 2, axis=0, keepdims=True)
    yhat = gamma * (y - mean) / jnp.sqrt(var + 1e-5) + beta
    h = yhat.shape[-1] // 2
    return yhat[:, :h] * jax.nn.sigmoid(yhat[:, h:])


if __name__ == "__main__":
    B, D_IN, D_OUT = 8, 16, 32   # GLU output width = 16

    key = jax.random.PRNGKey(0)
    kx, kw, kb = jax.random.split(key, 3)

    x = jax.random.normal(kx, (B, D_IN), dtype=jnp.float32)
    limit = (6.0 / (D_IN + D_OUT)) ** 0.5          # xavier-uniform-ish
    w = jax.random.uniform(kw, (D_IN, D_OUT), jnp.float32, -limit, limit)
    b = jax.random.uniform(kb, (1, D_OUT), jnp.float32, -0.1, 0.1)
    gamma = jnp.ones((1, D_OUT), jnp.float32)      # BatchNorm1d init
    beta = jnp.zeros((1, D_OUT), jnp.float32)

    params = prepare_glu_params(w, gamma, beta)    # once, at "init" time
    out = jax.block_until_ready(glu_layer(x, params))
    ref = _reference(x, w, b, gamma, beta)

    assert out.shape == (B, D_OUT // 2), out.shape
    # bf16 MXU inputs + bf16 intermediate y => loosened tolerance vs f32 ref.
    max_err = float(jnp.max(jnp.abs(out.astype(jnp.float32) - ref)))
    assert jnp.allclose(out.astype(jnp.float32), ref, atol=3e-2, rtol=3e-2), (
        "max abs err = %g" % max_err)

    # TODO(synk): BatchNorm running_mean/var buffer updates (a training-time
    # side effect, not part of the forward output) are not emitted.
    print("KERNEL_OK")
</pallas_src>

<mosaic_0001>
module attributes {stable_mosaic.version = 11 : i64} {
  func.func @_linear_stats_kernel(%arg0: i32, %arg1: memref<8x128xbf16, #tpu.memory_space<vmem>>, %arg2: memref<128x256xbf16, #tpu.memory_space<vmem>>, %arg3: memref<8x256xbf16, #tpu.memory_space<vmem>>, %arg4: memref<1x256xf32, #tpu.memory_space<vmem>>, %arg5: memref<1x256xf32, #tpu.memory_space<vmem>>) attributes {dimension_semantics = [#tpu.dimension_semantics<parallel>], iteration_bounds = array<i64: 1>, scalar_prefetch = 0 : i64, scratch_operands = 0 : i64, tpu.core_type = #tpu.core_type<tc>, window_params = [{transform_indices = @transform_0, window_bounds = array<i64: 8, 128>}, {pipeline_mode = #tpu.pipeline_mode<synchronous>, transform_indices = @transform_1, window_bounds = array<i64: 128, 256>}, {transform_indices = @transform_2, window_bounds = array<i64: 8, 256>}, {transform_indices = @transform_3, window_bounds = array<i64: 1, 256>}, {transform_indices = @transform_4, window_bounds = array<i64: 1, 256>}]} {
    %c0 = arith.constant 0 : index
    %c0_0 = arith.constant 0 : index
    %0 = vector.load %arg1[%c0, %c0_0] : memref<8x128xbf16, #tpu.memory_space<vmem>>, vector<8x128xbf16>
    %c0_1 = arith.constant 0 : index
    %c0_2 = arith.constant 0 : index
    %1 = vector.load %arg2[%c0_1, %c0_2] : memref<128x256xbf16, #tpu.memory_space<vmem>>, vector<128x256xbf16>
    %cst = arith.constant dense<0.000000e+00> : vector<8x256xf32>
    %2 = tpu.matmul %0, %1, %cst {dimension_numbers = #tpu.dot_dimension_numbers<[1], [0], [0], [1], [0, 0, 1, 1], [], []>} : vector<8x128xbf16>, vector<128x256xbf16>, vector<8x256xf32> -> vector<8x256xf32>
    %3 = arith.truncf %2 : vector<8x256xf32> to vector<8x256xbf16>
    %c0_3 = arith.constant 0 : index
    %c0_4 = arith.constant 0 : index
    %4 = vector.load %arg3[%c0_3, %c0_4] : memref<8x256xbf16, #tpu.memory_space<vmem>>, vector<8x256xbf16>
    tpu.vector_store %arg3[%c0_3, %c0_4], %3 {strides = array<i32>} : memref<8x256xbf16, #tpu.memory_space<vmem>>, vector<8x256xbf16>,
    %cst_5 = arith.constant dense<0.000000e+00> : vector<256xf32>
    %5 = vector.multi_reduction <add>, %2, %cst_5 [0] : vector<8x256xf32> to vector<256xf32>
    %6 = vector.shape_cast %5 : vector<256xf32> to vector<1x256xf32>
    %c0_6 = arith.constant 0 : index
    %c0_7 = arith.constant 0 : index
    %7 = vector.load %arg4[%c0_6, %c0_7] : memref<1x256xf32, #tpu.memory_space<vmem>>, vector<1x256xf32>
    tpu.vector_store %arg4[%c0_6, %c0_7], %6 {strides = array<i32>} : memref<1x256xf32, #tpu.memory_space<vmem>>, vector<1x256xf32>,
    %8 = arith.mulf %2, %2 : vector<8x256xf32>
    %cst_8 = arith.constant dense<0.000000e+00> : vector<256xf32>
    %9 = vector.multi_reduction <add>, %8, %cst_8 [0] : vector<8x256xf32> to vector<256xf32>
    %10 = vector.shape_cast %9 : vector<256xf32> to vector<1x256xf32>
    %c0_9 = arith.constant 0 : index
    %c0_10 = arith.constant 0 : index
    %11 = vector.load %arg5[%c0_9, %c0_10] : memref<1x256xf32, #tpu.memory_space<vmem>>, vector<1x256xf32>
    tpu.vector_store %arg5[%c0_9, %c0_10], %10 {strides = array<i32>} : memref<1x256xf32, #tpu.memory_space<vmem>>, vector<1x256xf32>,
    return
  }
  func.func @transform_0(%arg0: i32) -> (i32, i32) {
    %c0_i32 = arith.constant 0 : i32
    %c0_i32_0 = arith.constant 0 : i32
    return %arg0, %c0_i32 : i32, i32
  }
  func.func @transform_1(%arg0: i32) -> (i32, i32) {
    %c0_i32 = arith.constant 0 : i32
    %c0_i32_0 = arith.constant 0 : i32
    %c0_i32_1 = arith.constant 0 : i32
    return %c0_i32, %c0_i32_0 : i32, i32
  }
  func.func @transform_2(%arg0: i32) -> (i32, i32) {
    %c0_i32 = arith.constant 0 : i32
    %c0_i32_0 = arith.constant 0 : i32
    return %arg0, %c0_i32 : i32, i32
  }
  func.func @transform_3(%arg0: i32) -> (i32, i32) {
    %c0_i32 = arith.constant 0 : i32
    %c0_i32_0 = arith.constant 0 : i32
    return %arg0, %c0_i32 : i32, i32
  }
  func.func @transform_4(%arg0: i32) -> (i32, i32) {
    %c0_i32 = arith.constant 0 : i32
    %c0_i32_0 = arith.constant 0 : i32
    return %arg0, %c0_i32 : i32, i32
  }
}

</mosaic_0001>

<bundles_post_ra>
// kernel: tpu_custom_call.1
= control target key start
LH: loop header
LB: loop body
LE: loop exit
PB: predicated region body
PF: predicated region fallthrough
CT: control target
= control target key end

     0   :  { %10 = vsyncpa [#allocation3], 0  ;;  %s579_s0 = inlined_call_operand.hbm [shape: bf16[8,128], index: 0, kind: input, shape index: {}]   ;;  %s580_s1 = inlined_call_operand.hbm [shape: bf16[128,256], index: 1, kind: input, shape index: {}]   ;;  %s581_s2 = inlined_call_operand.hbm [shape: bf16[8,256], index: 2, kind: output, shape index: {0}]   ;;  %s582_s3 = inlined_call_operand.hbm [shape: f32[1,256], index: 3, kind: output, shape index: {1}]   ;;  %s583_s4 = inlined_call_operand.hbm [shape: f32[1,256], index: 4, kind: output, shape index: {2}]  }
   0x1   :  { %11 = vsyncpa [#allocation6], 0 }
   0x2   :  { %12 = vsyncpa [#allocation4], 0 }
   0x3   :  { %13 = vsyncpa [#allocation9], 0  ;;  %s470_s15 = smov [#allocation2]   ;;  %s471_s17 = smov [#allocation5]  }
   0x4   :  { %s20_s16 = sshll.u32 %s470_s15, 4  ;;  %s29_s18 = sshll.u32 %s471_s17, 4  ;;  %s21_s16 = int_to_ptr.vmem [resolvable:$true] %s20_s16  ;;  %s504_s18 = int_to_ptr.vmem [resolvable:$true] %s29_s18 }
   0x5   :  { %s352_s21 = scalar_lea.hbm %s579_s0, 64 }
   0x6   :  { %p353_p0 = scmp.ne.s32.totalorder %s579_s0, %s352_s21  ;;  %p356_p1 = scmp.lt.u32.totalorder %s352_s21, %s579_s0 }
   0x8   :  { %p358_p2 = pnand %p356_p1, %p353_p0 }
   0xa   :  { %361 = shalt.err (!%p358_p2)
}
   0xb   :  { %s362_s26 = scalar_lea.vmem %s21_s16, 64  ;;  %p367_p4 = scmp.lt.s32.totalorder %s21_s16, %s21_s16 }
   0xc   :  { %p363_p3 = scmp.ne.s32.totalorder %s21_s16, %s362_s26  ;;  %p368_p5 = scmp.lt.s32.totalorder %s362_s26, %s362_s26 }
   0xe   :  { %p369_p6 = por %p368_p5, %p367_p4 }
  0x10   :  { %p370_p7 = pnand %p369_p6, %p363_p3 }
  0x12   :  { %373 = shalt.err (!%p370_p7)
}
  0x13   :  { %23 = dma.hbm_to_vmem [thread:$0]  %s579_s0, 64, %s21_s16, [#allocation3]  }
  0x14   :  { %s374_s5 = scalar_lea.hbm %s580_s1, 2048 }
  0x15   :  { %p375_p8 = scmp.ne.s32.totalorder %s580_s1, %s374_s5  ;;  %p378_p9 = scmp.lt.u32.totalorder %s374_s5, %s580_s1 }
  0x17   :  { %p380_p10 = pnand %p378_p9, %p375_p8 }
  0x19   :  { %383 = shalt.err (!%p380_p10)
}
  0x1a   :  { %s384_s10 = scalar_lea.vmem %s504_s18, 2048  ;;  %p389_p12 = scmp.lt.s32.totalorder %s504_s18, %s504_s18 }
  0x1b   :  { %p385_p11 = scmp.ne.s32.totalorder %s504_s18, %s384_s10  ;;  %p390_p13 = scmp.lt.s32.totalorder %s384_s10, %s384_s10 }
  0x1d   :  { %p391_p0 = por %p390_p13, %p389_p12 }
  0x1f   :  { %p392_p1 = pnand %p391_p0, %p385_p11 }
  0x21   :  { %395 = shalt.err (!%p392_p1)
}
  0x22   :  { %s472_s0 = smov 128   ;;  %s473_s11 = smov 8  }
  0x23   :  { %35 = dma.hbm_to_vmem [thread:$0]  %s580_s1, 2048, %s504_s18, [#allocation6], %s472_s0, %s472_s0, %s473_s11  }
  0x24   :  { %462 = dma.done.wait [#allocation3], 64  }
  0x25   :  { %463 = vsyncadd [#allocation3], 4294967232 }
  0x26   :  { %464 = dma.done.wait [#allocation6], 2048  }
  0x27   :  { %465 = vsyncadd [#allocation6], 4294965248  ;;  %v474_v0 = vmov 0   ;;  %v328_v1 = vld [vmem:[#allocation5 + $0x4] ss:$8 sps:$4 sm:$0xff]   ;;  %s475_s1 = smov [#allocation7]   ;;  %v208_v33 = vlaneseq }
  0x28   :  { %172 = vmatprep.mubr.bf16.mxu0 %v474_v0  ;;  %v330_v2 = vld [vmem:[#allocation5] ss:$8 sps:$4 sm:$0xff]   ;;  %140 = vmatprep.subr.bf16.mxu0 %v328_v1  ;;  %v331_v3 = vld [vmem:[#allocation5 + $0x14] ss:$8 sps:$4 sm:$0xff]   ;;  %v333_v4 = vld [vmem:[#allocation5 + $0x10] ss:$8 sps:$4 sm:$0xff]  }
  0x29   :  { %141 = vmatpush1.bf16.msra.mxu0 %v330_v2  ;;  %v334_v5 = vld [vmem:[#allocation5 + $0x24] ss:$8 sps:$4 sm:$0xff]   ;;  %v336_v6 = vld [vmem:[#allocation5 + $0x20] ss:$8 sps:$4 sm:$0xff]   ;;  %v337_v7 = vld [vmem:[#allocation5 + $0x34] ss:$8 sps:$4 sm:$0xff]  }
  0x2a   :  { %142 = vmatprep.subr.bf16.mxu0 %v331_v3  ;;  %v339_v8 = vld [vmem:[#allocation5 + $0x30] ss:$8 sps:$4 sm:$0xff]   ;;  %v340_v9 = vld [vmem:[#allocation5 + $0x44] ss:$8 sps:$4 sm:$0xff]   ;;  %v342_v10 = vld [vmem:[#allocation5 + $0x40] ss:$8 sps:$4 sm:$0xff]  }
  0x2b   :  { %v343_v11 = vld [vmem:[#allocation5 + $0x54] ss:$8 sps:$4 sm:$0xff]   ;;  %v345_v12 = vld [vmem:[#allocation5 + $0x50] ss:$8 sps:$4 sm:$0xff]   ;;  %v346_v13 = vld [vmem:[#allocation5 + $0x64] ss:$8 sps:$4 sm:$0xff]  }
  0x2c   :  { %v348_v14 = vld [vmem:[#allocation5 + $0x60] ss:$8 sps:$4 sm:$0xff]   ;;  %v349_v15 = vld [vmem:[#allocation5 + $0x74] ss:$8 sps:$4 sm:$0xff]   ;;  %v351_v16 = vld [vmem:[#allocation5 + $0x70] ss:$8 sps:$4 sm:$0xff]  }
  0x2d   :  { %143 = vmatpush1.bf16.msra.mxu0 %v333_v4  ;;  %v43_v17 = vld [vmem:[#allocation2] sm:$0xf]  ;;  %s264_s14 = sshll.u32 %s475_s1, 4  ;;  %v476_v31 = vmov 1966171168   ;;  %s265_s14 = int_to_ptr.vmem [resolvable:$true] %s264_s14 }
  0x2e   :  { %144 = vmatprep.subr.bf16.mxu0 %v334_v5  ;;  %v206_v32 = vunpack.c.l.s4 %v476_v31  ;;  %s396_s15 = scalar_lea.vmem %s265_s14, 128  ;;  %p401_p3 = scmp.lt.s32.totalorder %s265_s14, %s265_s14 }
  0x2f   :  { %p397_p2 = scmp.ne.s32.totalorder %s265_s14, %s396_s15  ;;  %p402_p4 = scmp.lt.s32.totalorder %s396_s15, %s396_s15 }
  0x31   :  { %145 = vmatpush1.bf16.msra.mxu0 %v336_v6  ;;  %p403_p5 = por %p402_p4, %p401_p3 }
  0x32   :  { %146 = vmatprep.subr.bf16.mxu0 %v337_v7 }
  0x33   :  { %p404_p6 = pnand %p403_p5, %p397_p2 }
  0x35   :  { %147 = vmatpush1.bf16.msra.mxu0 %v339_v8 }
  0x36   :  { %148 = vmatprep.subr.bf16.mxu0 %v340_v9 }
  0x39   :  { %149 = vmatpush1.bf16.msra.mxu0 %v342_v10 }
  0x3a   :  { %150 = vmatprep.subr.bf16.mxu0 %v343_v11 }
  0x3d   :  { %151 = vmatpush1.bf16.msra.mxu0 %v345_v12 }
  0x3e   :  { %152 = vmatprep.subr.bf16.mxu0 %v346_v13 }
  0x41   :  { %153 = vmatpush1.bf16.msra.mxu0 %v348_v14 }
  0x42   :  { %154 = vmatprep.subr.bf16.mxu0 %v349_v15 }
  0x45   :  { %155 = vmatpush1.bf16.msra.mxu0 %v351_v16 }
  0x48   :  { %173 = vmatmul.mubr.bf16.vlgmr.msra.gmra.mrb[0].mxu0 %v43_v17 }
 0x11b   :  { %v174_v18 = vpop.f32.mrb[0].mxu0 }
 0x11c   :  { %v190_v19 = vrot.slane %v174_v18, 4  ;;  %v225_v20 = vmul.f32 %v174_v18, %v174_v18  ;;  %v176_v21 = vpop.f32.mrb[1].mxu0 }
 0x11d   :  { %v196_v22 = vrot.slane %v176_v21, 4  ;;  %v226_v23 = vmul.f32 %v176_v21, %v176_v21  ;;  %v178_v24 = vpop.f32.mrb[2].mxu0  ;;  %v318_v25 = vpack.c.bf16 %v176_v21, %v174_v18 }
 0x11e   :  { %v191_v26 = vadd.f32 %v190_v19, %v174_v18  ;;  %v227_v27 = vrot.slane %v225_v20, 4  ;;  %v179_v28 = vpop.f32.mrb[3].mxu0 }
 0x11f   :  { %v197_v29 = vadd.f32 %v196_v22, %v176_v21  ;;  %v233_v30 = vrot.slane %v226_v23, 4  ;;  %189 = vst [vmem:[#allocation7] sm:$0xff] %v318_v25 }
 0x120   :  { %v192_v34 = vrot.slane %v191_v26, 2  ;;  %v228_v35 = vadd.f32 %v227_v27, %v225_v20 }
 0x121   :  { %407 = shalt.err (!%p404_p6)
}
 0x122   :  { %s408_s18 = scalar_lea.hbm %s581_s2, 128 }
 0x123   :  { %p409_p7 = scmp.ne.s32.totalorder %s581_s2, %s408_s18  ;;  %p412_p8 = scmp.lt.u32.totalorder %s408_s18, %s581_s2 }
 0x125   :  { %p414_p9 = pnand %p412_p8, %p409_p7 }
 0x127   :  { %417 = shalt.err (!%p414_p9)
}
 0x128   :  { %267 = dma.vmem_to_hbm [thread:$0]  %s265_s14, 128, %s581_s2, [#allocation4]   ;;  %v198_v36 = vrot.slane %v197_v29, 2  ;;  %v234_v37 = vadd.f32 %v233_v30, %v226_v23  ;;  %v193_v38 = vadd.f32 %v192_v34, %v191_v26  ;;  %v229_v39 = vrot.slane %v228_v35, 2 }
 0x129   :  { %v207_v42 = vunpack.c.0.s8 %v206_v32  ;;  %v209_v43 = vshrl.u32 %v208_v33, 7  ;;  %s477_s2 = smov [#allocation8]   ;;  %vm547_vm0 = vcmp.lt.s32.totalorder %v208_v33, 256  ;;  %s478_s26 = smov [#allocation10]  }
 0x12a   :  { %v199_v40 = vadd.f32 %v198_v36, %v197_v29  ;;  %v235_v41 = vrot.slane %v234_v37, 2  ;;  %v194_v44 = vrot.slane %v193_v38, 1  ;;  %v230_v45 = vadd.f32 %v229_v39, %v228_v35  ;;  %s274_s25 = sshll.u32 %s477_s2, 4  ;;  %s284_s27 = sshll.u32 %s478_s26, 4  ;;  %s275_s25 = int_to_ptr.vmem [resolvable:$true] %s274_s25  ;;  %s285_s27 = int_to_ptr.vmem [resolvable:$true] %s284_s27 }
 0x12b   :  { %v210_v52 = vsub.s32 %v207_v42, %v209_v43  ;;  %s418_s28 = scalar_lea.vmem %s275_s25, 32  ;;  %p423_p11 = scmp.lt.s32.totalorder %s275_s25, %s275_s25 }
 0x12c   :  { %v200_v46 = vrot.slane %v199_v40, 1  ;;  %v236_v47 = vadd.f32 %v235_v41, %v234_v37  ;;  %v195_v48 = vadd.f32 %v194_v44, %v193_v38  ;;  %v231_v49 = vrot.slane %v230_v45, 1  ;;  %p419_p10 = scmp.ne.s32.totalorder %s275_s25, %s418_s28  ;;  %p424_p12 = scmp.lt.s32.totalorder %s418_s28, %s418_s28 }
 0x12e   :  { %v201_v50 = vadd.f32 %v200_v46, %v199_v40  ;;  %v237_v51 = vrot.slane %v236_v47, 1  ;;  %v232_v53 = vadd.f32 %v231_v49, %v230_v45  ;;  %p425_p13 = por %p424_p12, %p423_p11 }
 0x130   :  { %v238_v54 = vadd.f32 %v237_v51, %v236_v47  ;;  %v204_v55 = vcombine.low %v195_v48, %v201_v50  ;;  %p426_p0 = pnand %p425_p13, %p419_p10 }
 0x132   :  { %v211_v56 = vrot.slane %v204_v55, %v210_v52  ;;  %v241_v57 = vcombine.low %v232_v53, %v238_v54 }
 0x134   :  { %v218_v59 = vrot.slane %v211_v56, %v210_v52  ;;  %v248_v60 = vrot.slane %v241_v57, %v210_v52 }
 0x136   :  { %224 = vst.msk [vmem:[#allocation8] sm:$0x3] %vm547_vm0, %v218_v59  ;;  %v255_v61 = vrot.slane %v248_v60, %v210_v52 }
 0x137   :  { %429 = shalt.err (!%p426_p0)
}
 0x138   :  { %s430_s5 = scalar_lea.hbm %s582_s3, 32 }
 0x139   :  { %p431_p1 = scmp.ne.s32.totalorder %s582_s3, %s430_s5  ;;  %p434_p2 = scmp.lt.u32.totalorder %s430_s5, %s582_s3 }
 0x13b   :  { %p436_p3 = pnand %p434_p2, %p431_p1 }
 0x13d   :  { %439 = shalt.err (!%p436_p3)
}
 0x13e   :  { %277 = dma.vmem_to_hbm [thread:$0]  %s275_s25, 32, %s582_s3, [#allocation9]   ;;  %257 = vst.msk [vmem:[#allocation10] sm:$0x3] %vm547_vm0, %v255_v61 }
 0x13f   :  { %s440_s11 = scalar_lea.vmem %s285_s27, 32  ;;  %p445_p5 = scmp.lt.s32.totalorder %s285_s27, %s285_s27 }
 0x140   :  { %p441_p4 = scmp.ne.s32.totalorder %s285_s27, %s440_s11  ;;  %p446_p6 = scmp.lt.s32.totalorder %s440_s11, %s440_s11 }
 0x142   :  { %p447_p7 = por %p446_p6, %p445_p5 }
 0x144   :  { %p448_p8 = pnand %p447_p7, %p441_p4 }
 0x146   :  { %451 = shalt.err (!%p448_p8)
}
 0x147   :  { %s452_s1 = scalar_lea.hbm %s583_s4, 32 }
 0x148   :  { %p453_p9 = scmp.ne.s32.totalorder %s583_s4, %s452_s1  ;;  %p456_p10 = scmp.lt.u32.totalorder %s452_s1, %s583_s4 }
 0x14a   :  { %p458_p11 = pnand %p456_p10, %p453_p9 }
 0x14c   :  { %461 = shalt.err (!%p458_p11)
}
 0x14d   :  { %287 = dma.vmem_to_hbm [thread:$0]  %s285_s27, 32, %s583_s4, [#allocation9]  }
 0x14e   :  { %466 = dma.done.wait [#allocation4], 128  }
 0x14f   :  { %467 = vsyncadd [#allocation4], 4294967168 }
 0x150   :  { %468 = dma.done.wait [#allocation9], 64  }
 0x151   :  { %469 = vsyncadd [#allocation9], 4294967232 }
 0x152   :  { %297 = vsyncpa [#allocation3], 1 }
 0x153   :  { %298 = vsyncpa [#allocation6], 1 }
 0x154   :  { %299 = vsyncpa [#allocation4], 1 }
 0x155   :  { %300 = vsyncpa [#allocation9], 1 }

</bundles_post_ra>
